<compile_context>
chip_gen: v5e
topology: v5e:2x2
jax: 0.10.0
libtpu: 0.0.40
codegen_flags: <defaults>
</compile_context>

<pallas_src>
import functools

import jax
import jax.numpy as jnp
from jax import lax
from jax.experimental import pallas as pl
from jax.experimental.pallas import tpu as pltpu


def _round_up(x, m):
    return (x + m - 1) // m * m


def _cdiv(a, b):
    return -(-a // b)


def _tpu_params():
    """Generation-aware (scoped-VMEM budget, MXU M-tile width, is_v7x)."""
    kind = ""
    try:
        kind = (jax.devices()[0].device_kind or "").lower()
    except Exception:
        pass
    is_v7 = "v7" in kind
    wide_mxu = is_v7 or ("v6" in kind)            # 256x256 MXU on v6e / v7x
    vmem_cap = None
    try:
        vmem_cap = int(pltpu.get_tpu_info().vmem_capacity_bytes)
    except Exception:
        vmem_cap = None
    if vmem_cap is None:
        vmem_cap = (64 << 20) if is_v7 else (128 << 20)
    # ~3/4 of physical VMEM as the scoped limit: ~96 MiB on v5e/v6e, ~48 MiB on v7x.
    budget = min(vmem_cap * 3 // 4, 96 << 20)
    return budget, (256 if wide_mxu else 128), is_v7


def _conv1d_norm_kernel(w_ref, x_ref, g_ref, b_ref, o_ref,
                        sum_ref, ssq_ref, scale_ref, shift_ref, *, inv_n, eps):
    """One (channel block, pass, lane tile) grid step.

    grid = (i: channel blocks [parallel], p: pass in {0,1} [arbitrary],
            j: lane tiles [arbitrary])

    w_ref : (TC, CKp)  weight block (compute dtype)   -- resident per i
    x_ref : (CKp, TL)  im2col patches lane tile       -- varies with j
    g_ref : (TC, 1)    gamma (f32)
    b_ref : (TC, 1)    beta  (f32)
    o_ref : (TC, TL)   output tile; written only in pass 1
    scratch: per-channel sum / sum^2 partials and finalized scale / shift.

    Zero-padded lanes / contraction rows / channels contribute nothing to the
    conv result nor to the statistics; inv_n = 1/(B*L) counts valid lanes only.
    """
    p = pl.program_id(1)
    j = pl.program_id(2)

    # ---- pass 0: conv tile -> accumulate per-channel sum / sum-of-squares ----
    @pl.when(p == 0)
    def _stats_pass():
        @pl.when(j == 0)
        def _init():
            sum_ref[...] = jnp.zeros_like(sum_ref)
            ssq_ref[...] = jnp.zeros_like(ssq_ref)

        y = jnp.dot(w_ref[...], x_ref[...], preferred_element_type=jnp.float32)
        sum_ref[...] += jnp.sum(y, axis=-1, keepdims=True)
        ssq_ref[...] += jnp.sum(y * y, axis=-1, keepdims=True)

    # ---- pass 1, first tile: finalize BatchNorm scale / shift ----------------
    @pl.when(jnp.logical_and(p == 1, j == 0))
    def _finalize():
        mean = sum_ref[...] * inv_n
        # TODO(synk): switch to a centered / Welford-style combine if B*L grows
        # large enough for E[y^2]-E[y]^2 cancellation to matter in f32.
        var = ssq_ref[...] * inv_n - mean * mean
        scale = g_ref[...] * lax.rsqrt(var + eps)
        scale_ref[...] = scale
        shift_ref[...] = b_ref[...] - mean * scale

    # ---- pass 1: recompute conv tile, normalize (FMA) + ReLU, store once -----
    @pl.when(p == 1)
    def _store_pass():
        y = jnp.dot(w_ref[...], x_ref[...], preferred_element_type=jnp.float32)
        o_ref[...] = jnp.maximum(
            y * scale_ref[...] + shift_ref[...], 0.0).astype(o_ref.dtype)


def conv1d_norm(x, weight, bias, gamma, beta, *, kernel_size, eps=1e-5,
                compute_dtype=jnp.bfloat16, out_dtype=jnp.float32,
                lane_tile=None, channel_tile=None):
    """Forward pass of the PyTorch Conv1dNorm module (ReLU activation).

    x:      (B, C_in, L) f32
    weight: (C_out, C_in, K) f32  (PyTorch Conv1d layout)
    bias:   (C_out,)  -- ignored: exactly cancelled by batch-stats BatchNorm.
    gamma, beta: (C_out,) BatchNorm1d affine parameters.
    out_dtype=jnp.bfloat16 halves output writeback if the consumer tolerates it.
    lane_tile / channel_tile: optional tile-size overrides (testing / tuning).
    Returns (B, C_out, L) in out_dtype.
    """
    del bias  # absorbed by the batch-statistics BatchNorm that follows the conv
    B, C_in, L = x.shape
    C_out = weight.shape[0]
    K = kernel_size

    # PyTorch module padding: odd K -> (K-1)//2; even K -> (K+1)//2 then drop the
    # last output.  Both reduce to out[t] = sum_k W[:,:,k] @ x_pad[:,:,t+k], t < L.
    pad = (K - 1) // 2 if K % 2 != 0 else (K + 1) // 2
    x_pad = jnp.pad(x, ((0, 0), (0, 0), (pad, pad)))           # (B, C_in, L+2*pad)

    # im2col (wrapper-side): patches[(ci,k),(b,t)] = x_pad[b,ci,t+k].
    # TODO(synk): fold im2col into the kernel (x tile + halo, K shifted matmuls)
    # to avoid the K-fold HBM amplification of x.
    cols = jnp.stack([x_pad[:, :, k:k + L] for k in range(K)], axis=2)     # (B,Ci,K,L)
    patches = jnp.transpose(cols, (1, 2, 0, 3)).reshape(C_in * K, B * L)   # (Ci*K, B*L)
    w2 = weight.reshape(C_out, C_in * K)

    dsz = jnp.dtype(compute_dtype).itemsize
    osz = jnp.dtype(out_dtype).itemsize
    # Contraction pad follows the dtype's sublane packing (8 f32 / 16 bf16 / 32 int8).
    CK = C_in * K
    CKp = _round_up(CK, {4: 8, 2: 16, 1: 32}.get(dsz, 8))
    N = B * L

    budget, mxu_m, is_v7 = _tpu_params()

    # Channel (MXU-M) tile: <= mxu_m rows, minimal C_out padding waste.
    if channel_tile is not None:
        tc = max(8, _round_up(channel_tile, 8))
    else:
        tc = max(8, _round_up(_cdiv(C_out, _cdiv(C_out, mxu_m)), 8))
        if is_v7 and _round_up(C_out, tc) // tc < 2 and tc > 8:
            tc = max(8, _round_up(_cdiv(tc, 2), 8))   # >=2 parallel blocks for 2 TCs
    Cp = _round_up(C_out, tc)

    # Lane tile: largest 128-multiple whose real per-step residency fits budget:
    # weight dbuf + patches dbuf + output dbuf + ~3x (tc,tl) f32 matmul intermediates.
    Np0 = _round_up(N, 128)
    if lane_tile is not None:
        tl = max(128, _round_up(lane_tile, 128))
    else:
        fixed = 2 * tc * CKp * dsz + 16 * tc * 4 + (2 << 20)    # weight dbuf + scratch + slack
        per_lane = 2 * CKp * dsz + 2 * tc * osz + 4 * tc * 4    # patches/out dbuf + f32 interm.
        tl = 128
        for cand in (4096, 2048, 1024, 512, 256, 128):
            if cand > max(Np0, 128):
                continue
            if fixed + per_lane * cand <= budget:
                tl = cand
                break
    Np = _round_up(N, tl)

    # TPU-friendly zero padding (padded lanes/rows/channels contribute exactly 0).
    patches_p = jnp.zeros((CKp, Np), compute_dtype).at[:CK, :N].set(
        patches.astype(compute_dtype))
    w2_p = jnp.zeros((Cp, CKp), compute_dtype).at[:C_out, :CK].set(
        w2.astype(compute_dtype))
    g_p = jnp.zeros((Cp, 1), jnp.float32).at[:C_out, 0].set(gamma.astype(jnp.float32))
    b_p = jnp.zeros((Cp, 1), jnp.float32).at[:C_out, 0].set(beta.astype(jnp.float32))

    kernel = functools.partial(_conv1d_norm_kernel, inv_n=1.0 / N, eps=eps)

    out_p = pl.pallas_call(
        kernel,
        out_shape=jax.ShapeDtypeStruct((Cp, Np), out_dtype),
        grid_spec=pltpu.PrefetchScalarGridSpec(
            num_scalar_prefetch=0,
            grid=(Cp // tc, 2, Np // tl),
            in_specs=[
                pl.BlockSpec((tc, CKp), lambda i, p, j: (i, 0)),   # weight block
                pl.BlockSpec((CKp, tl), lambda i, p, j: (0, j)),   # patches lane tile
                pl.BlockSpec((tc, 1), lambda i, p, j: (i, 0)),     # gamma
                pl.BlockSpec((tc, 1), lambda i, p, j: (i, 0)),     # beta
            ],
            # Pass 0 parks the (unwritten) output on lane tile 0; pass 1 writes
            # each lane-dense tile exactly once before it is flushed.
            out_specs=pl.BlockSpec((tc, tl), lambda i, p, j: (i, j * p)),
            scratch_shapes=[pltpu.VMEM((tc, 1), jnp.float32)] * 4,
        ),
        compiler_params=pltpu.CompilerParams(
            dimension_semantics=("parallel", "arbitrary", "arbitrary"),
            vmem_limit_bytes=int(budget)),
    )(w2_p, patches_p, g_p, b_p)

    # Drop padding; return PyTorch NCL layout (B, C_out, L).
    # TODO(synk): expose a channels-first (C_out, B, L) return to skip this
    # epilogue transpose when the consumer allows it.
    return out_p[:C_out, :N].reshape(C_out, B, L).transpose(1, 0, 2)


def _reference(x, weight, bias, gamma, beta, kernel_size, eps=1e-5):
    """Pure-JAX reference mirroring the PyTorch forward (training-mode BN)."""
    K = kernel_size
    pad = (K - 1) // 2 if K % 2 != 0 else (K + 1) // 2
    y = lax.conv_general_dilated(
        x, weight, window_strides=(1,), padding=[(pad, pad)],
        dimension_numbers=("NCH", "OIH", "NCH"))
    if K % 2 == 0:
        y = y[:, :, :-1]
    y = y + bias[None, :, None]
    mean = jnp.mean(y, axis=(0, 2), keepdims=True)
    var = jnp.mean((y - mean) ** 2, axis=(0, 2), keepdims=True)
    yn = (y - mean) / jnp.sqrt(var + eps)
    yn = yn * gamma[None, :, None] + beta[None, :, None]
    return jnp.maximum(yn, 0.0)


def _make_params(key, C_in, C_out, K):
    kw, kb, kg, kbe = jax.random.split(key, 4)
    bound = 1.0 / (C_in * K) ** 0.5          # PyTorch Conv1d default init bound
    weight = jax.random.uniform(kw, (C_out, C_in, K), jnp.float32, -bound, bound)
    bias = jax.random.uniform(kb, (C_out,), jnp.float32, -bound, bound)
    gamma = 1.0 + 0.1 * jax.random.normal(kg, (C_out,), jnp.float32)
    beta = 0.1 * jax.random.normal(kbe, (C_out,), jnp.float32)
    return weight, bias, gamma, beta


if __name__ == "__main__":
    key = jax.random.PRNGKey(0)
    kx1, kp1, kx2, kp2, kx3, kp3 = jax.random.split(key, 6)

    # --- Case 1: odd kernel size -------------------------------------------------
    B, C_in, C_out, L, K = 2, 4, 8, 16, 5
    x = jax.random.normal(kx1, (B, C_in, L), jnp.float32)
    weight, bias, gamma, beta = _make_params(kp1, C_in, C_out, K)
    ref = _reference(x, weight, bias, gamma, beta, K)

    out_f32 = jax.block_until_ready(
        conv1d_norm(x, weight, bias, gamma, beta, kernel_size=K,
                    compute_dtype=jnp.float32))
    assert out_f32.shape == (B, C_out, L)
    assert jnp.allclose(out_f32, ref, atol=1e-4, rtol=1e-4), "f32 mismatch (odd K)"

    out_bf16 = jax.block_until_ready(
        conv1d_norm(x, weight, bias, gamma, beta, kernel_size=K,
                    compute_dtype=jnp.bfloat16))
    assert jnp.allclose(out_bf16, ref, atol=5e-2, rtol=5e-2), "bf16-compute mismatch"

    out_bf16o = jax.block_until_ready(
        conv1d_norm(x, weight, bias, gamma, beta, kernel_size=K,
                    compute_dtype=jnp.float32, out_dtype=jnp.bfloat16))
    assert out_bf16o.dtype == jnp.bfloat16
    assert jnp.allclose(out_bf16o.astype(jnp.float32), ref,
                        atol=5e-2, rtol=5e-2), "bf16-output mismatch"

    # --- Case 2: even kernel size (trim-last path) + non-multiple-of-8 C_out ------
    B2, C_in2, C_out2, L2, K2 = 2, 4, 6, 16, 4
    x2 = jax.random.normal(kx2, (B2, C_in2, L2), jnp.float32)
    w2, b2, g2, be2 = _make_params(kp2, C_in2, C_out2, K2)
    ref2 = _reference(x2, w2, b2, g2, be2, K2)

    out2 = jax.block_until_ready(
        conv1d_norm(x2, w2, b2, g2, be2, kernel_size=K2, compute_dtype=jnp.float32))
    assert out2.shape == (B2, C_out2, L2)
    assert jnp.allclose(out2, ref2, atol=1e-4, rtol=1e-4), "f32 mismatch (even K)"

    # --- Case 3: multi-tile grid (forced small lane/channel tiles) ----------------
    # Exercises the lane-tiled stats accumulation + finalize path over several
    # channel blocks and lane tiles: grid = (3, 2, 4).
    B3, C_in3, C_out3, L3, K3 = 2, 3, 40, 200, 3
    x3 = jax.random.normal(kx3, (B3, C_in3, L3), jnp.float32)
    w3, b3, g3, be3 = _make_params(kp3, C_in3, C_out3, K3)
    ref3 = _reference(x3, w3, b3, g3, be3, K3)

    out3 = jax.block_until_ready(
        conv1d_norm(x3, w3, b3, g3, be3, kernel_size=K3, compute_dtype=jnp.float32,
                    lane_tile=128, channel_tile=16))
    assert out3.shape == (B3, C_out3, L3)
    assert jnp.allclose(out3, ref3, atol=1e-4, rtol=1e-4), "f32 mismatch (tiled grid)"

    print("KERNEL_OK")
</pallas_src>

<mosaic_0001>
module attributes {stable_mosaic.version = 11 : i64} {
  func.func @_conv1d_norm_kernel(%arg0: i32, %arg1: i32, %arg2: i32, %arg3: memref<8x24xf32, #tpu.memory_space<vmem>>, %arg4: memref<24x128xf32, #tpu.memory_space<vmem>>, %arg5: memref<8x1xf32, #tpu.memory_space<vmem>>, %arg6: memref<8x1xf32, #tpu.memory_space<vmem>>, %arg7: memref<8x128xf32, #tpu.memory_space<vmem>>, %arg8: memref<8x1xf32, #tpu.memory_space<vmem>>, %arg9: memref<8x1xf32, #tpu.memory_space<vmem>>, %arg10: memref<8x1xf32, #tpu.memory_space<vmem>>, %arg11: memref<8x1xf32, #tpu.memory_space<vmem>>) attributes {dimension_semantics = [#tpu.dimension_semantics<parallel>, #tpu.dimension_semantics<arbitrary>, #tpu.dimension_semantics<arbitrary>], iteration_bounds = array<i64: 1, 2, 1>, scalar_prefetch = 0 : i64, scratch_operands = 4 : i64, tpu.core_type = #tpu.core_type<tc>, window_params = [{transform_indices = @transform_0, window_bounds = array<i64: 8, 24>}, {transform_indices = @transform_1, window_bounds = array<i64: 24, 128>}, {transform_indices = @transform_2, window_bounds = array<i64: 8, 1>}, {transform_indices = @transform_3, window_bounds = array<i64: 8, 1>}, {transform_indices = @transform_4, window_bounds = array<i64: 8, 128>}]} {
    %c0_i32 = arith.constant 0 : i32
    %0 = arith.cmpi eq, %arg1, %c0_i32 : i32
    %1 = arith.extui %0 : i1 to i32
    %c0_i32_0 = arith.constant 0 : i32
    %2 = arith.cmpi ne, %1, %c0_i32_0 : i32
    scf.if %2 {
      %c0_i32_5 = arith.constant 0 : i32
      %11 = arith.cmpi eq, %arg2, %c0_i32_5 : i32
      %12 = arith.extui %11 : i1 to i32
      %c0_i32_6 = arith.constant 0 : i32
      %13 = arith.cmpi ne, %12, %c0_i32_6 : i32
      scf.if %13 {
        %cst_20 = arith.constant 0.000000e+00 : f32
        %28 = vector.broadcast %cst_20 : f32 to vector<8x1xf32>
        %c0_21 = arith.constant 0 : index
        %c0_22 = arith.constant 0 : index
        %29 = vector.load %arg8[%c0_21, %c0_22] : memref<8x1xf32, #tpu.memory_space<vmem>>, vector<8x1xf32>
        tpu.vector_store %arg8[%c0_21, %c0_22], %28 {strides = array<i32>} : memref<8x1xf32, #tpu.memory_space<vmem>>, vector<8x1xf32>,
        %cst_23 = arith.constant 0.000000e+00 : f32
        %30 = vector.broadcast %cst_23 : f32 to vector<8x1xf32>
        %c0_24 = arith.constant 0 : index
        %c0_25 = arith.constant 0 : index
        %31 = vector.load %arg9[%c0_24, %c0_25] : memref<8x1xf32, #tpu.memory_space<vmem>>, vector<8x1xf32>
        tpu.vector_store %arg9[%c0_24, %c0_25], %30 {strides = array<i32>} : memref<8x1xf32, #tpu.memory_space<vmem>>, vector<8x1xf32>,
      } else {
      }
      %c0 = arith.constant 0 : index
      %c0_7 = arith.constant 0 : index
      %14 = vector.load %arg3[%c0, %c0_7] : memref<8x24xf32, #tpu.memory_space<vmem>>, vector<8x24xf32>
      %c0_8 = arith.constant 0 : index
      %c0_9 = arith.constant 0 : index
      %15 = vector.load %arg4[%c0_8, %c0_9] : memref<24x128xf32, #tpu.memory_space<vmem>>, vector<24x128xf32>
      %cst = arith.constant dense<0.000000e+00> : vector<8x128xf32>
      %16 = tpu.matmul %14, %15, %cst {dimension_numbers = #tpu.dot_dimension_numbers<[1], [0], [0], [1], [0, 0, 1, 1], [], []>} : vector<8x24xf32>, vector<24x128xf32>, vector<8x128xf32> -> vector<8x128xf32>
      %c0_10 = arith.constant 0 : index
      %c0_11 = arith.constant 0 : index
      %17 = vector.load %arg8[%c0_10, %c0_11] : memref<8x1xf32, #tpu.memory_space<vmem>>, vector<8x1xf32>
      %cst_12 = arith.constant dense<0.000000e+00> : vector<8xf32>
      %18 = vector.multi_reduction <add>, %16, %cst_12 [1] : vector<8x128xf32> to vector<8xf32>
      %19 = vector.shape_cast %18 : vector<8xf32> to vector<8x1xf32>
      %20 = arith.addf %17, %19 : vector<8x1xf32>
      %c0_13 = arith.constant 0 : index
      %c0_14 = arith.constant 0 : index
      %21 = vector.load %arg8[%c0_13, %c0_14] : memref<8x1xf32, #tpu.memory_space<vmem>>, vector<8x1xf32>
      tpu.vector_store %arg8[%c0_13, %c0_14], %20 {strides = array<i32>} : memref<8x1xf32, #tpu.memory_space<vmem>>, vector<8x1xf32>,
      %c0_15 = arith.constant 0 : index
      %c0_16 = arith.constant 0 : index
      %22 = vector.load %arg9[%c0_15, %c0_16] : memref<8x1xf32, #tpu.memory_space<vmem>>, vector<8x1xf32>
      %23 = arith.mulf %16, %16 : vector<8x128xf32>
      %cst_17 = arith.constant dense<0.000000e+00> : vector<8xf32>
      %24 = vector.multi_reduction <add>, %23, %cst_17 [1] : vector<8x128xf32> to vector<8xf32>
      %25 = vector.shape_cast %24 : vector<8xf32> to vector<8x1xf32>
      %26 = arith.addf %22, %25 : vector<8x1xf32>
      %c0_18 = arith.constant 0 : index
      %c0_19 = arith.constant 0 : index
      %27 = vector.load %arg9[%c0_18, %c0_19] : memref<8x1xf32, #tpu.memory_space<vmem>>, vector<8x1xf32>
      tpu.vector_store %arg9[%c0_18, %c0_19], %26 {strides = array<i32>} : memref<8x1xf32, #tpu.memory_space<vmem>>, vector<8x1xf32>,
    } else {
    }
    %c1_i32 = arith.constant 1 : i32
    %3 = arith.cmpi eq, %arg1, %c1_i32 : i32
    %c0_i32_1 = arith.constant 0 : i32
    %4 = arith.cmpi eq, %arg2, %c0_i32_1 : i32
    %5 = arith.andi %3, %4 : i1
    %6 = arith.extui %5 : i1 to i32
    %c0_i32_2 = arith.constant 0 : i32
    %7 = arith.cmpi ne, %6, %c0_i32_2 : i32
    scf.if %7 {
      %c0 = arith.constant 0 : index
      %c0_5 = arith.constant 0 : index
      %11 = vector.load %arg8[%c0, %c0_5] : memref<8x1xf32, #tpu.memory_space<vmem>>, vector<8x1xf32>
      %cst = arith.constant 3.125000e-02 : f32
      %12 = vector.broadcast %cst : f32 to vector<8x1xf32>
      %13 = arith.mulf %11, %12 : vector<8x1xf32>
      %c0_6 = arith.constant 0 : index
      %c0_7 = arith.constant 0 : index
      %14 = vector.load %arg9[%c0_6, %c0_7] : memref<8x1xf32, #tpu.memory_space<vmem>>, vector<8x1xf32>
      %cst_8 = arith.constant 3.125000e-02 : f32
      %15 = vector.broadcast %cst_8 : f32 to vector<8x1xf32>
      %16 = arith.mulf %14, %15 : vector<8x1xf32>
      %17 = arith.mulf %13, %13 : vector<8x1xf32>
      %18 = arith.subf %16, %17 : vector<8x1xf32>
      %c0_9 = arith.constant 0 : index
      %c0_10 = arith.constant 0 : index
      %19 = vector.load %arg5[%c0_9, %c0_10] : memref<8x1xf32, #tpu.memory_space<vmem>>, vector<8x1xf32>
      %cst_11 = arith.constant 9.99999974E-6 : f32
      %20 = vector.broadcast %cst_11 : f32 to vector<8x1xf32>
      %21 = arith.addf %18, %20 : vector<8x1xf32>
      %22 = math.rsqrt %21 : vector<8x1xf32>
      %23 = arith.mulf %19, %22 : vector<8x1xf32>
      %c0_12 = arith.constant 0 : index
      %c0_13 = arith.constant 0 : index
      %24 = vector.load %arg10[%c0_12, %c0_13] : memref<8x1xf32, #tpu.memory_space<vmem>>, vector<8x1xf32>
      tpu.vector_store %arg10[%c0_12, %c0_13], %23 {strides = array<i32>} : memref<8x1xf32, #tpu.memory_space<vmem>>, vector<8x1xf32>,
      %c0_14 = arith.constant 0 : index
      %c0_15 = arith.constant 0 : index
      %25 = vector.load %arg6[%c0_14, %c0_15] : memref<8x1xf32, #tpu.memory_space<vmem>>, vector<8x1xf32>
      %26 = arith.mulf %13, %23 : vector<8x1xf32>
      %27 = arith.subf %25, %26 : vector<8x1xf32>
      %c0_16 = arith.constant 0 : index
      %c0_17 = arith.constant 0 : index
      %28 = vector.load %arg11[%c0_16, %c0_17] : memref<8x1xf32, #tpu.memory_space<vmem>>, vector<8x1xf32>
      tpu.vector_store %arg11[%c0_16, %c0_17], %27 {strides = array<i32>} : memref<8x1xf32, #tpu.memory_space<vmem>>, vector<8x1xf32>,
    } else {
    }
    %c1_i32_3 = arith.constant 1 : i32
    %8 = arith.cmpi eq, %arg1, %c1_i32_3 : i32
    %9 = arith.extui %8 : i1 to i32
    %c0_i32_4 = arith.constant 0 : i32
    %10 = arith.cmpi ne, %9, %c0_i32_4 : i32
    scf.if %10 {
      %c0 = arith.constant 0 : index
      %c0_5 = arith.constant 0 : index
      %11 = vector.load %arg3[%c0, %c0_5] : memref<8x24xf32, #tpu.memory_space<vmem>>, vector<8x24xf32>
      %c0_6 = arith.constant 0 : index
      %c0_7 = arith.constant 0 : index
      %12 = vector.load %arg4[%c0_6, %c0_7] : memref<24x128xf32, #tpu.memory_space<vmem>>, vector<24x128xf32>
      %cst = arith.constant dense<0.000000e+00> : vector<8x128xf32>
      %13 = tpu.matmul %11, %12, %cst {dimension_numbers = #tpu.dot_dimension_numbers<[1], [0], [0], [1], [0, 0, 1, 1], [], []>} : vector<8x24xf32>, vector<24x128xf32>, vector<8x128xf32> -> vector<8x128xf32>
      %c0_8 = arith.constant 0 : index
      %c0_9 = arith.constant 0 : index
      %14 = vector.load %arg10[%c0_8, %c0_9] : memref<8x1xf32, #tpu.memory_space<vmem>>, vector<8x1xf32>
      %15 = vector.broadcast %14 : vector<8x1xf32> to vector<8x128xf32>
      %16 = arith.mulf %13, %15 : vector<8x128xf32>
      %c0_10 = arith.constant 0 : index
      %c0_11 = arith.constant 0 : index
      %17 = vector.load %arg11[%c0_10, %c0_11] : memref<8x1xf32, #tpu.memory_space<vmem>>, vector<8x1xf32>
      %18 = vector.broadcast %17 : vector<8x1xf32> to vector<8x128xf32>
      %19 = arith.addf %16, %18 : vector<8x128xf32>
      %cst_12 = arith.constant 0.000000e+00 : f32
      %20 = vector.broadcast %cst_12 : f32 to vector<8x128xf32>
      %21 = arith.maximumf %19, %20 : vector<8x128xf32>
      %c0_13 = arith.constant 0 : index
      %c0_14 = arith.constant 0 : index
      %22 = vector.load %arg7[%c0_13, %c0_14] : memref<8x128xf32, #tpu.memory_space<vmem>>, vector<8x128xf32>
      tpu.vector_store %arg7[%c0_13, %c0_14], %21 {strides = array<i32>} : memref<8x128xf32, #tpu.memory_space<vmem>>, vector<8x128xf32>,
    } else {
    }
    return
  }
  func.func @transform_0(%arg0: i32, %arg1: i32, %arg2: i32) -> (i32, i32) {
    %c0_i32 = arith.constant 0 : i32
    %c0_i32_0 = arith.constant 0 : i32
    return %arg0, %c0_i32 : i32, i32
  }
  func.func @transform_1(%arg0: i32, %arg1: i32, %arg2: i32) -> (i32, i32) {
    %c0_i32 = arith.constant 0 : i32
    %c0_i32_0 = arith.constant 0 : i32
    return %c0_i32, %arg2 : i32, i32
  }
  func.func @transform_2(%arg0: i32, %arg1: i32, %arg2: i32) -> (i32, i32) {
    %c0_i32 = arith.constant 0 : i32
    %c0_i32_0 = arith.constant 0 : i32
    return %arg0, %c0_i32 : i32, i32
  }
  func.func @transform_3(%arg0: i32, %arg1: i32, %arg2: i32) -> (i32, i32) {
    %c0_i32 = arith.constant 0 : i32
    %c0_i32_0 = arith.constant 0 : i32
    return %arg0, %c0_i32 : i32, i32
  }
  func.func @transform_4(%arg0: i32, %arg1: i32, %arg2: i32) -> (i32, i32) {
    %0 = arith.muli %arg2, %arg1 : i32
    %c0_i32 = arith.constant 0 : i32
    return %arg0, %0 : i32, i32
  }
}

</mosaic_0001>

<bundles_post_ra>
// kernel: tpu_custom_call.1
= control target key start
LH: loop header
LB: loop body
LE: loop exit
PB: predicated region body
PF: predicated region fallthrough
CT: control target
= control target key end

     0   :  { %9 = vsyncpa [#allocation7], 0  ;;  %s803_s0 = inlined_call_operand.vmem [shape: f32[8,24], index: 0, kind: input, shape index: {}]   ;;  %s804_s1 = inlined_call_operand.hbm [shape: f32[24,128], index: 1, kind: input, shape index: {}]   ;;  %s805_s2 = inlined_call_operand.vmem [shape: f32[8,1], index: 2, kind: input, shape index: {}]   ;;  %s806_s3 = inlined_call_operand.vmem [shape: f32[8,1], index: 3, kind: input, shape index: {}]   ;;  %s807_s4 = inlined_call_operand.hbm [shape: f32[8,128], index: 4, kind: output, shape index: {}]  }
   0x1   :  { %10 = vsyncpa [#allocation8], 0 }
   0x2   :  { %12 = vsyncpa [#allocation8 + $0x1], 0  ;;  %s734_s15 = smov 0   ;;  %s736_s16 = smov 0  }
   0x3   :  { %s738_s17 = smov 0  }
   0x4 LB: > { %s540_s18 = sadd.s32 4294967295, %s701_s17   ;;  %s541_s19 = sadd.s32 4294967294, %s701_s17   ;;  %s701_s17 = sphi %s738_s17, %s18_s17   ;;  %s697_s16 = sphi %s736_s16, %s810_s16   ;;  %s693_s15 = sphi %s734_s15, %s809_s15  }
   0x5   : > { %s33_s20 = sadd.s32 1, %s697_s16  ;;  %p542_p0 = scmp.ge.s32.totalorder %s701_s17, 1 }
   0x6   : > { %p35_p1 = scmp.ge.s32.totalorder %s33_s20, 2  ;;  %p176_p2 = scmp.lt.s32.totalorder %s701_s17, 3 }
   0x7   : > { %p756_p3 = scmp.eq.s32.totalorder %s540_s18, 0  ;;  %s196_s24 = sshll.u32 %s804_s1, 4  ;;  %s197_s24 = int_to_ptr.hbm [resolvable:$true] %s196_s24 }
   0x8   : > { %s812_s20 = smov (%p35_p1, %s33_s20), 0  ;;  %p177_p4 = pnand %p542_p0, %p176_p2 }
   0x9   : > { %s703_s25 = smov [#allocation6]   ;;  %s704_s27 = smov 128  }
   0xa   : > { %p567_p5 = pneg %p177_p4  ;;  %s198_s26 = sshll.u32 %s703_s25, 4  ;;  %s199_s26 = int_to_ptr.vmem [resolvable:$true] %s198_s26 }
   0xb   : > { %s705_s28 = smov 8   ;;  %228 = sbr.rel (%p177_p4) target bundleno = 471 (0x1d7), region = 36 }
   0xc   : > { %p568_p6 = pnand %p756_p3, %p567_p5 }
   0xe   : > { %570 = dma.hbm_to_vmem [thread:$0]  (!%p568_p6), %s197_s24, 384, %s199_s26, [#allocation7], %s704_s27, %s704_s27, %s705_s28  }
  0x10   : > { %684 = dma.done.wait (%p756_p3), [#allocation7], 384  }
  0x11   : > { %686 = vsyncadd (%p756_p3), [#allocation7], 4294966912  ;;  %p549_p7 = scmp.ne.s32.totalorder %s693_s15, 0 }
  0x13   : > { %278 = sbr.rel (%p549_p7) target bundleno = 283 (0x11b), region = 44 }
  0x18   : > { %v289_v0 = vld [vmem:[#allocation6 + $0x10] sm:$0xff]  ;;  %v288_v1 = vld [vmem:[#allocation6 + $0x8] sm:$0xff]  ;;  %v287_v2 = vld [vmem:[#allocation6] sm:$0xff]  ;;  %vm290_vm0 = vcmask 195584   ;;  %vm283_vm1 = vcmask 7168   ;;  %v706_v6 = vmov 0.0  }
  0x19   : > { %307 = vmatpush.msra.mxu0 %v289_v0  ;;  %v286_v3 = vld [vmem:[%s803_s0] sm:$0xff]  ;;  %284 = vst.msk [vmem:[#allocation2] sm:$0xff] %vm283_vm1, %v706_v6 }
  0x1a   : > { %285 = vst.msk [vmem:[#allocation3] sm:$0xff] %vm283_vm1, %v706_v6 }
  0x1b   : > { %308 = vmatpush.msra.mxu0 %v288_v1 }
  0x1d   : > { %309 = vmatpush.msra.mxu0 %v287_v2 }
  0x1e   : > { %550 = vmatmul.msk.f32.vlgmr.msra.gmra.mxu0 %vm290_vm0, %v286_v3 }
  0x20   : > { %v314_v7 = vld [vmem:[#allocation2] sm:$0xff] }
  0x21   : > { %v320_v10 = vld [vmem:[#allocation3] sm:$0xff] }
  0x9b   : > { %v311_v4 = vpop.f32.mrf.mxu0 }
  0x9c   : > { %315 = vadd.xlane.f32.xlu0 %v311_v4  ;;  %v321_v5 = vmul.f32 %v311_v4, %v311_v4 }
  0xa4   : > { %322 = vadd.xlane.f32.xlu0 %v321_v5 }
 0x10f   : > { %v316_v8 = vpop.xlane.xlu0 %315 }
 0x110   : > { %v317_v9 = vadd.f32 %v316_v8, %v314_v7 }
 0x112   : > { %319 = vst.msk [vmem:[#allocation2] sm:$0xff] %vm283_vm1, %v317_v9 }
 0x117   : > { %v323_v11 = vpop.xlane.xlu0 %322 }
 0x118   : > { %v324_v12 = vadd.f32 %v323_v11, %v320_v10 }
 0x11a   : > { %325 = vst.msk [vmem:[#allocation3] sm:$0xff] %vm283_vm1, %v324_v12 }
 0x11b PF: > { %p326_p8 = scmp.eq.s32.totalorder %s693_s15, 1 }
 0x11c   : > { %v332_v13 = vld [vmem:[#allocation2] sm:$0xff] (%p326_p8)  ;;  %vm351_vm5 = vcmask (%p326_p8), 7168  }
 0x11d   : > { %331 = sbr.rel (!%p326_p8) target bundleno = 321 (0x141), region = 52  ;;  %v333_v15 = vmul.f32 (%p326_p8), 0.03125, %v332_v13  ;;  %v338_v25 = vld [vmem:[%s805_s2] sm:$0xff] (%p326_p8) }
 0x11e   : > { %v353_v29 = vld [vmem:[%s806_s3] sm:$0xff] (%p326_p8) }
 0x11f   : > { %v336_v17 = vmul.f32 (%p326_p8), %v333_v15, %v333_v15 }
 0x121   : > { %v334_v14 = vld [vmem:[#allocation3] sm:$0xff] (%p326_p8) }
 0x122   : > { %v335_v16 = vmul.f32 0.03125, %v334_v14 }
 0x124   : > { %v337_v18 = vsub.f32 %v335_v16, %v336_v17 }
 0x126   : > { %v339_v19 = vadd.f32 1e-05, %v337_v18 }
 0x128   : > { %610 = vrsqrt.f32 %v339_v19  ;;  %vm346_vm2 = vweird.f32 %v339_v19 }
 0x12e   : > { %v611_v20 = vpop.eup %610 }
 0x12f   : > { %v341_v21 = vmul.f32 %v611_v20, %v339_v19  ;;  %vm347_vm3 = vweird.f32 %v611_v20 }
 0x130   : > { %vm348_vm4 = vmor %vm346_vm2, %vm347_vm3 }
 0x131   : > { %v342_v22 = vmul.f32 %v611_v20, %v341_v21 }
 0x133   : > { %v343_v23 = vmul.f32 0.5, %v342_v22 }
 0x135   : > { %v344_v24 = vsub.f32 1.5, %v343_v23 }
 0x137   : > { %v345_v26 = vmul.f32 %v611_v20, %v344_v24 }
 0x139   : > { %v349_v27 = vsel %vm348_vm4, %v611_v20, %v345_v26 }
 0x13a   : > { %v350_v28 = vmul.f32 %v349_v27, %v338_v25 }
 0x13c   : > { %352 = vst.msk [vmem:[#allocation4] sm:$0xff] %vm351_vm5, %v350_v28  ;;  %v354_v30 = vmul.f32 %v350_v28, %v333_v15 }
 0x13e   : > { %v355_v31 = vsub.f32 %v353_v29, %v354_v30 }
 0x140   : > { %356 = vst.msk [vmem:[#allocation5] sm:$0xff] %vm351_vm5, %v355_v31 }
 0x141 PF: > { %p552_p9 = scmp.ne.s32.totalorder %s693_s15, 1 }
 0x143   : > { %359 = sbr.rel (%p552_p9) target bundleno = 467 (0x1d3), region = 56 }
 0x148   : > { %v363_v32 = vld [vmem:[#allocation6 + $0x10] sm:$0xff]  ;;  %v362_v34 = vld [vmem:[#allocation6 + $0x8] sm:$0xff]  ;;  %v707_v35 = vmov 0   ;;  %v361_v36 = vld [vmem:[#allocation6] sm:$0xff]  ;;  %vm364_vm6 = vcmask 195584  }
 0x149   : > { %v388_v33 = vld [vmem:[#allocation4] sm:$0xff]  ;;  %381 = vmatpush.msra.mxu0 %v363_v32  ;;  %612 = vset.pattern.permute.xlu0 %v707_v35  ;;  %v360_v37 = vld [vmem:[%s803_s0] sm:$0xff]  ;;  %v395_v38 = vld [vmem:[#allocation5] sm:$0xff] }
 0x14a   : > { %391 = vperm.xlu0 %612, %v388_v33  }
 0x14b   : > { %382 = vmatpush.msra.mxu0 %v362_v34 }
 0x14d   : > { %383 = vmatpush.msra.mxu0 %v361_v36 }
 0x14e   : > { %553 = vmatmul.msk.f32.vlgmr.msra.gmra.mxu0 %vm364_vm6, %v360_v37 }
 0x152   : > { %398 = vperm.xlu0 %612, %v395_v38  }
 0x1bc   : > { %v392_v39 = vpop.permute.xlu0 %391 }
 0x1c4   : > { %v399_v42 = vpop.permute.xlu0 %398 }
 0x1cb   : > { %v385_v40 = vpop.f32.mrf.mxu0 }
 0x1cc   : > { %v394_v41 = vmul.f32 %v392_v39, %v385_v40 }
 0x1ce   : > { %v401_v43 = vadd.f32 %v399_v42, %v394_v41 }
 0x1d0   : > { %v402_v44 = vmax.f32 %v401_v43, 0.0 }
 0x1d2   : > { %403 = vst [vmem:[#allocation9] sm:$0xff] %v402_v44 }
 0x1d3 PF: > { %p577_p10 = scmp.eq.s32.totalorder %s540_s18, 1  ;;  %s421_s13 = sshll.u32 %s807_s4, 4  ;;  %s422_s13 = int_to_ptr.hbm [resolvable:$true] %s421_s13 }
 0x1d4   : > { %s708_s14 = smov [#allocation9]  }
 0x1d5   : > { %s419_s15 = sshll.u32 %s708_s14, 4  ;;  %s420_s15 = int_to_ptr.vmem [resolvable:$true] %s419_s15 }
 0x1d6   : > { %564 = dma.vmem_to_hbm [thread:$0]  (%p577_p10), %s420_s15, 128, %s422_s13, [#allocation8]  }
 0x1d7 PF: > { %p578_p11 = scmp.ge.s32.totalorder %s701_s17, 2  ;;  %p579_p12 = scmp.eq.s32.totalorder %s541_s19, 1 }
 0x1d9   : > { %p572_p13 = pnand %p579_p12, %p578_p11 }
 0x1db   : > { %p573_p0 = pneg %p572_p13 }
 0x1dd   : > { %688 = dma.done.wait (%p573_p0), [#allocation8], 128  }
 0x1de   : > { %690 = vsyncadd (%p573_p0), [#allocation8], 4294967168  ;;  %s18_s17 = sadd.s32 1, %s701_s17   ;;  %s809_s15 = smov %s697_s16 }
 0x1df   : > { %p15_p1 = scmp.ge.s32.totalorder %s18_s17, 4   ;;  %s810_s16 = smov %s812_s20 }
 0x1e1   :  { %17 = sbr.rel (!%p15_p1) target bundleno = 4 (0x4), region = 99 }
 0x1e6   :  { %440 = vsyncpa [#allocation7], 1 }
 0x1e7   :  { %442 = vsyncpa [#allocation7 + $0x1], 1 }
 0x1e8   :  { %443 = vsyncpa [#allocation8], 1 }
 0x1e9   :  { %445 = vsyncpa [#allocation8 + $0x1], 1 }

</bundles_post_ra>
